<compile_context>
chip_gen: v5e
topology: v5e:2x2
jax: 0.10.0
libtpu: 0.0.40
codegen_flags: <defaults>
</compile_context>

<pallas_src>
import jax
import jax.numpy as jnp
from jax.experimental import pallas as pl
from jax.experimental.pallas import tpu as pltpu

# ----------------------------- model hyper-params -----------------------------
D_MODEL = 32
HEADS = 4
D_FF = 64
D_TRIM = 16
SEQ = 8
BATCH = 2
HEAD_DIM = D_TRIM // HEADS
LN_EPS = 1e-6
VEC_W = max(D_FF, 3 * D_TRIM, D_MODEL)   # width of the packed bias/LN buffer (= 64)


# --------------------------------- kernel ------------------------------------
def encoder_layer_kernel(x_ref, mask_ref, wqkv_ref, wo_ref, w1_ref, w2_ref,
                         vec_ref, o_ref):
    x = x_ref[...]                                   # (B, S, D) f32
    B, S, D = x.shape
    x2 = x.reshape(B * S, D)

    # packed small params: rows = [b_qkv | b_o | ln_g | ln_b | b_1 | b_2]
    vec = vec_ref[...]                               # (6, VEC_W) f32
    b_qkv = vec[0:1, 0:3 * D_TRIM]
    b_o   = vec[1:2, 0:D_MODEL]
    ln_g  = vec[2:3, 0:D_MODEL]
    ln_b  = vec[3:4, 0:D_MODEL]
    b_1   = vec[4:5, 0:D_FF]
    b_2   = vec[5:6, 0:D_MODEL]

    # additive key-padding bias, computed once for all heads / query rows
    bias = jnp.where(mask_ref[...] > 0, jnp.float32(-1e18), jnp.float32(0.0))  # (B,1,S)

    # fused q/k/v projection: one MXU matmul (bf16 operands, f32 accumulate);
    # 1/sqrt(head_dim) is pre-folded into the Q columns of wqkv at pack time.
    qkv = jnp.dot(x2.astype(jnp.bfloat16), wqkv_ref[...],
                  preferred_element_type=jnp.float32) + b_qkv       # (B*S, 3*D_TRIM)
    qkv3 = qkv.reshape(B, S, 3 * D_TRIM)

    # split heads onto a leading batch axis (leading-axis stack of lane slices;
    # avoids 4-D transposes / minor-dim concats which Mosaic may not lower cleanly)
    def split_heads(off):
        parts = [qkv3[:, :, off + h * HEAD_DIM: off + (h + 1) * HEAD_DIM]
                 for h in range(HEADS)]
        return jnp.stack(parts, axis=0).reshape(HEADS * B, S, HEAD_DIM)

    qh = split_heads(0).astype(jnp.bfloat16)                        # (H*B, S, dh)
    kh = split_heads(D_TRIM).astype(jnp.bfloat16)
    vh = split_heads(2 * D_TRIM).astype(jnp.bfloat16)

    # one batched score contraction for all heads (bf16 MXU operands, f32 acc)
    s = jnp.einsum('bqd,bkd->bqk', qh, kh,
                   preferred_element_type=jnp.float32)              # (H*B, S, S)
    s = s.reshape(HEADS, B, S, S) + bias[None]                      # single bias add

    # softmax in f32: one max / exp / sum / reciprocal for the whole block
    smax = jnp.max(s, axis=-1, keepdims=True)
    p = jnp.exp(s - smax)
    p = p * pl.reciprocal(jnp.sum(p, axis=-1, keepdims=True), approx=True)
    p = p.reshape(HEADS * B, S, S).astype(jnp.bfloat16)
    # TODO(synk): softmax block only lights 8 of 128 lanes (S=8); lane-densifying
    # would need a keys-on-sublanes relayout whose transpose costs more at this size.

    # one batched context contraction; heads stay on the leading axis
    ctx = jnp.einsum('bqk,bkd->bqd', p, vh,
                     preferred_element_type=jnp.float32)            # (H*B, S, dh)
    ctx_h = ctx.reshape(HEADS, B * S, HEAD_DIM).astype(jnp.bfloat16)

    # output projection: head-batched matmul against Wo (H, dh, D) + sum over heads
    attn = jnp.einsum('hrd,hdm->hrm', ctx_h, wo_ref[...],
                      preferred_element_type=jnp.float32)           # (H, B*S, D)
    out = jnp.sum(attn, axis=0) + b_o + x2                          # residual (dropout = id)

    # PositionwiseFeedForward: pre-LN -> w1 -> relu -> w2 -> +residual (f32 VPU math)
    mu = jnp.mean(out, axis=-1, keepdims=True)
    var = jnp.mean((out - mu) ** 2, axis=-1, keepdims=True)
    ln = (out - mu) * jax.lax.rsqrt(var + LN_EPS) * ln_g + ln_b
    inter = jnp.maximum(
        jnp.dot(ln.astype(jnp.bfloat16), w1_ref[...],
                preferred_element_type=jnp.float32) + b_1, 0.0)
    ffn = jnp.dot(inter.astype(jnp.bfloat16), w2_ref[...],
                  preferred_element_type=jnp.float32) + b_2
    o_ref[...] = (ffn + out).reshape(B, S, D)


# ----------------------- one-time host-side packing ---------------------------
def pack_params(params):
    """Hoisted out of the per-call path: fused QKV weight (scale folded into Q),
    head-reshaped Wo, bf16 big weights, one packed bias/LN buffer."""
    (wq, bq, wk, bk, wv, bv, wo, bo, ln_g, ln_b, w1, b1, w2, b2) = params
    scale = 1.0 / float(HEAD_DIM) ** 0.5
    wqkv = jnp.concatenate([wq * scale, wk, wv], axis=1).astype(jnp.bfloat16)  # (D, 3*D_TRIM)
    wo_r = wo.reshape(HEADS, HEAD_DIM, D_MODEL).astype(jnp.bfloat16)           # (H, dh, D)
    w1_b = w1.astype(jnp.bfloat16)
    w2_b = w2.astype(jnp.bfloat16)

    def row(v):
        return jnp.pad(v, ((0, 0), (0, VEC_W - v.shape[1])))
    vec = jnp.concatenate(
        [row(jnp.concatenate([bq * scale, bk, bv], axis=1)),   # b_qkv (48)
         row(bo), row(ln_g), row(ln_b), row(b1), row(b2)],
        axis=0).astype(jnp.float32)                            # (6, VEC_W)
    return (wqkv, wo_r, w1_b, w2_b, vec)


# -------------------------------- wrapper -------------------------------------
@jax.jit
def transformer_encoder_layer(x, mask, packed):
    B, S, D = x.shape
    wqkv, wo_r, w1_b, w2_b, vec = packed
    # No grid: single invocation, whole-array VMEM operands, no pipeline buffers.
    in_specs = [pl.BlockSpec(memory_space=pltpu.MemorySpace.VMEM) for _ in range(7)]
    return pl.pallas_call(
        encoder_layer_kernel,
        out_shape=jax.ShapeDtypeStruct((B, S, D), jnp.float32),
        in_specs=in_specs,
        out_specs=pl.BlockSpec(memory_space=pltpu.MemorySpace.VMEM),
    )(x, mask, wqkv, wo_r, w1_b, w2_b, vec)


# --------------------------- pure-JAX reference --------------------------------
def reference(x, mask, params):
    (wq, bq, wk, bk, wv, bv, wo, bo, ln_g, ln_b, w1, b1, w2, b2) = params
    B, S, D = x.shape
    q = x @ wq + bq
    k = x @ wk + bk
    v = x @ wv + bv
    qh = q.reshape(B, S, HEADS, HEAD_DIM).transpose(0, 2, 1, 3)
    kh = k.reshape(B, S, HEADS, HEAD_DIM).transpose(0, 2, 1, 3)
    vh = v.reshape(B, S, HEADS, HEAD_DIM).transpose(0, 2, 1, 3)
    scores = jnp.einsum('bhqd,bhkd->bhqk', qh, kh) / (HEAD_DIM ** 0.5)
    m = (mask[:, None, :, :].astype(jnp.float32) > 0.5)    # (B,1,1,S)
    scores = jnp.where(m, -1e18, scores)
    attn = jax.nn.softmax(scores, axis=-1)
    ctx = jnp.einsum('bhqk,bhkd->bhqd', attn, vh).transpose(0, 2, 1, 3).reshape(B, S, D_TRIM)
    out = ctx @ wo + bo + x
    mu = jnp.mean(out, axis=-1, keepdims=True)
    var = jnp.mean((out - mu) ** 2, axis=-1, keepdims=True)
    ln = (out - mu) * jax.lax.rsqrt(var + LN_EPS) * ln_g + ln_b
    inter = jnp.maximum(ln @ w1 + b1, 0.0)
    return inter @ w2 + b2 + out


# ----------------------------------- main --------------------------------------
if __name__ == "__main__":
    key = jax.random.PRNGKey(0)
    ks = jax.random.split(key, 16)

    def init(k, shape, scale=0.05):
        return (jax.random.normal(k, shape, jnp.float32) * scale)

    params = (
        init(ks[0], (D_MODEL, D_TRIM)),  init(ks[1], (1, D_TRIM)),   # Wq, bq
        init(ks[2], (D_MODEL, D_TRIM)),  init(ks[3], (1, D_TRIM)),   # Wk, bk
        init(ks[4], (D_MODEL, D_TRIM)),  init(ks[5], (1, D_TRIM)),   # Wv, bv
        init(ks[6], (D_TRIM, D_MODEL)),  init(ks[7], (1, D_MODEL)),  # Wo, bo
        jnp.ones((1, D_MODEL), jnp.float32), jnp.zeros((1, D_MODEL), jnp.float32),  # LN g,b
        init(ks[8], (D_MODEL, D_FF)),    init(ks[9], (1, D_FF)),     # W1, b1
        init(ks[10], (D_FF, D_MODEL)),   init(ks[11], (1, D_MODEL)), # W2, b2
    )

    x = jax.random.normal(ks[12], (BATCH, SEQ, D_MODEL), jnp.float32)
    lens = jnp.array([SEQ, SEQ - 2])
    mask = (jnp.arange(SEQ)[None, None, :] >= lens[:, None, None]).astype(jnp.int32)  # (B,1,S)

    packed = pack_params(params)              # one-time operand packing
    packed = jax.block_until_ready(packed)

    y = transformer_encoder_layer(x, mask, packed)
    y = jax.block_until_ready(y)

    y_ref = reference(x, mask, params)
    assert y.shape == (BATCH, SEQ, D_MODEL)
    assert jnp.allclose(y, y_ref, atol=1e-2, rtol=1e-2), "mismatch vs reference"

    # TODO(synk): dropout layers are identity here (deterministic eval-mode forward).
    print("KERNEL_OK")
</pallas_src>

<mosaic_0001>
module attributes {stable_mosaic.version = 11 : i64} {
  func.func @encoder_layer_kernel(%arg0: memref<2x8x32xf32, #tpu.memory_space<vmem>>, %arg1: memref<2x1x8xi32, #tpu.memory_space<vmem>>, %arg2: memref<32x48xbf16, #tpu.memory_space<vmem>>, %arg3: memref<4x4x32xbf16, #tpu.memory_space<vmem>>, %arg4: memref<32x64xbf16, #tpu.memory_space<vmem>>, %arg5: memref<64x32xbf16, #tpu.memory_space<vmem>>, %arg6: memref<6x64xf32, #tpu.memory_space<vmem>>, %arg7: memref<2x8x32xf32, #tpu.memory_space<vmem>>) attributes {dimension_semantics = [], scalar_prefetch = 0 : i64, scratch_operands = 0 : i64, tpu.core_type = #tpu.core_type<tc>} {
    %c0 = arith.constant 0 : index
    %c0_0 = arith.constant 0 : index
    %c0_1 = arith.constant 0 : index
    %0 = vector.load %arg0[%c0, %c0_0, %c0_1] : memref<2x8x32xf32, #tpu.memory_space<vmem>>, vector<2x8x32xf32>
    %1 = vector.shape_cast %0 : vector<2x8x32xf32> to vector<16x32xf32>
    %c0_2 = arith.constant 0 : index
    %c0_3 = arith.constant 0 : index
    %2 = vector.load %arg6[%c0_2, %c0_3] : memref<6x64xf32, #tpu.memory_space<vmem>>, vector<6x64xf32>
    %3 = vector.extract_strided_slice %2 {offsets = [0, 0], sizes = [1, 48], strides = [1, 1]} : vector<6x64xf32> to vector<1x48xf32>
    %4 = vector.extract_strided_slice %2 {offsets = [1, 0], sizes = [1, 32], strides = [1, 1]} : vector<6x64xf32> to vector<1x32xf32>
    %5 = vector.extract_strided_slice %2 {offsets = [2, 0], sizes = [1, 32], strides = [1, 1]} : vector<6x64xf32> to vector<1x32xf32>
    %6 = vector.extract_strided_slice %2 {offsets = [3, 0], sizes = [1, 32], strides = [1, 1]} : vector<6x64xf32> to vector<1x32xf32>
    %7 = vector.extract_strided_slice %2 {offsets = [4, 0], sizes = [1, 64], strides = [1, 1]} : vector<6x64xf32> to vector<1x64xf32>
    %8 = vector.extract_strided_slice %2 {offsets = [5, 0], sizes = [1, 32], strides = [1, 1]} : vector<6x64xf32> to vector<1x32xf32>
    %c0_4 = arith.constant 0 : index
    %c0_5 = arith.constant 0 : index
    %c0_6 = arith.constant 0 : index
    %9 = vector.load %arg1[%c0_4, %c0_5, %c0_6] : memref<2x1x8xi32, #tpu.memory_space<vmem>>, vector<2x1x8xi32>
    %c0_i32 = arith.constant 0 : i32
    %10 = vector.broadcast %c0_i32 : i32 to vector<2x1x8xi32>
    %11 = arith.cmpi sgt, %9, %10 : vector<2x1x8xi32>
    %cst = arith.constant -9.99999984E+17 : f32
    %cst_7 = arith.constant 0.000000e+00 : f32
    %12 = vector.broadcast %cst : f32 to vector<2x1x8xf32>
    %13 = vector.broadcast %cst_7 : f32 to vector<2x1x8xf32>
    %14 = arith.select %11, %12, %13 : vector<2x1x8xi1>, vector<2x1x8xf32>
    %15 = arith.truncf %1 : vector<16x32xf32> to vector<16x32xbf16>
    %c0_8 = arith.constant 0 : index
    %c0_9 = arith.constant 0 : index
    %16 = vector.load %arg2[%c0_8, %c0_9] : memref<32x48xbf16, #tpu.memory_space<vmem>>, vector<32x48xbf16>
    %cst_10 = arith.constant dense<0.000000e+00> : vector<16x48xf32>
    %17 = tpu.matmul %15, %16, %cst_10 {dimension_numbers = #tpu.dot_dimension_numbers<[1], [0], [0], [1], [0, 0, 1, 1], [], []>} : vector<16x32xbf16>, vector<32x48xbf16>, vector<16x48xf32> -> vector<16x48xf32>
    %18 = vector.broadcast %3 : vector<1x48xf32> to vector<16x48xf32>
    %19 = arith.addf %17, %18 : vector<16x48xf32>
    %20 = vector.shape_cast %19 : vector<16x48xf32> to vector<2x8x48xf32>
    %21 = vector.extract_strided_slice %20 {offsets = [0, 0, 0], sizes = [2, 8, 4], strides = [1, 1, 1]} : vector<2x8x48xf32> to vector<2x8x4xf32>
    %22 = vector.extract_strided_slice %20 {offsets = [0, 0, 4], sizes = [2, 8, 4], strides = [1, 1, 1]} : vector<2x8x48xf32> to vector<2x8x4xf32>
    %23 = vector.extract_strided_slice %20 {offsets = [0, 0, 8], sizes = [2, 8, 4], strides = [1, 1, 1]} : vector<2x8x48xf32> to vector<2x8x4xf32>
    %24 = vector.extract_strided_slice %20 {offsets = [0, 0, 12], sizes = [2, 8, 4], strides = [1, 1, 1]} : vector<2x8x48xf32> to vector<2x8x4xf32>
    %25 = vector.shape_cast %21 : vector<2x8x4xf32> to vector<1x2x8x4xf32>
    %26 = vector.shape_cast %22 : vector<2x8x4xf32> to vector<1x2x8x4xf32>
    %27 = vector.shape_cast %23 : vector<2x8x4xf32> to vector<1x2x8x4xf32>
    %28 = vector.shape_cast %24 : vector<2x8x4xf32> to vector<1x2x8x4xf32>
    %29 = tpu.concatenate %25, %26, %27, %28 in 0 : vector<1x2x8x4xf32>, vector<1x2x8x4xf32>, vector<1x2x8x4xf32>, vector<1x2x8x4xf32> -> vector<4x2x8x4xf32>
    %30 = vector.shape_cast %29 : vector<4x2x8x4xf32> to vector<8x8x4xf32>
    %31 = arith.truncf %30 : vector<8x8x4xf32> to vector<8x8x4xbf16>
    %32 = vector.extract_strided_slice %20 {offsets = [0, 0, 16], sizes = [2, 8, 4], strides = [1, 1, 1]} : vector<2x8x48xf32> to vector<2x8x4xf32>
    %33 = vector.extract_strided_slice %20 {offsets = [0, 0, 20], sizes = [2, 8, 4], strides = [1, 1, 1]} : vector<2x8x48xf32> to vector<2x8x4xf32>
    %34 = vector.extract_strided_slice %20 {offsets = [0, 0, 24], sizes = [2, 8, 4], strides = [1, 1, 1]} : vector<2x8x48xf32> to vector<2x8x4xf32>
    %35 = vector.extract_strided_slice %20 {offsets = [0, 0, 28], sizes = [2, 8, 4], strides = [1, 1, 1]} : vector<2x8x48xf32> to vector<2x8x4xf32>
    %36 = vector.shape_cast %32 : vector<2x8x4xf32> to vector<1x2x8x4xf32>
    %37 = vector.shape_cast %33 : vector<2x8x4xf32> to vector<1x2x8x4xf32>
    %38 = vector.shape_cast %34 : vector<2x8x4xf32> to vector<1x2x8x4xf32>
    %39 = vector.shape_cast %35 : vector<2x8x4xf32> to vector<1x2x8x4xf32>
    %40 = tpu.concatenate %36, %37, %38, %39 in 0 : vector<1x2x8x4xf32>, vector<1x2x8x4xf32>, vector<1x2x8x4xf32>, vector<1x2x8x4xf32> -> vector<4x2x8x4xf32>
    %41 = vector.shape_cast %40 : vector<4x2x8x4xf32> to vector<8x8x4xf32>
    %42 = arith.truncf %41 : vector<8x8x4xf32> to vector<8x8x4xbf16>
    %43 = vector.extract_strided_slice %20 {offsets = [0, 0, 32], sizes = [2, 8, 4], strides = [1, 1, 1]} : vector<2x8x48xf32> to vector<2x8x4xf32>
    %44 = vector.extract_strided_slice %20 {offsets = [0, 0, 36], sizes = [2, 8, 4], strides = [1, 1, 1]} : vector<2x8x48xf32> to vector<2x8x4xf32>
    %45 = vector.extract_strided_slice %20 {offsets = [0, 0, 40], sizes = [2, 8, 4], strides = [1, 1, 1]} : vector<2x8x48xf32> to vector<2x8x4xf32>
    %46 = vector.extract_strided_slice %20 {offsets = [0, 0, 44], sizes = [2, 8, 4], strides = [1, 1, 1]} : vector<2x8x48xf32> to vector<2x8x4xf32>
    %47 = vector.shape_cast %43 : vector<2x8x4xf32> to vector<1x2x8x4xf32>
    %48 = vector.shape_cast %44 : vector<2x8x4xf32> to vector<1x2x8x4xf32>
    %49 = vector.shape_cast %45 : vector<2x8x4xf32> to vector<1x2x8x4xf32>
    %50 = vector.shape_cast %46 : vector<2x8x4xf32> to vector<1x2x8x4xf32>
    %51 = tpu.concatenate %47, %48, %49, %50 in 0 : vector<1x2x8x4xf32>, vector<1x2x8x4xf32>, vector<1x2x8x4xf32>, vector<1x2x8x4xf32> -> vector<4x2x8x4xf32>
    %52 = vector.shape_cast %51 : vector<4x2x8x4xf32> to vector<8x8x4xf32>
    %53 = arith.truncf %52 : vector<8x8x4xf32> to vector<8x8x4xbf16>
    "tpu.trace_start"() <{level = 10 : i32, message = "bqd,bkd->bqk"}> : () -> ()
    %cst_11 = arith.constant dense<0.000000e+00> : vector<8x8x8xf32>
    %54 = tpu.matmul %31, %42, %cst_11 {dimension_numbers = #tpu.dot_dimension_numbers<[2], [2], [1], [1], [0, 0, 0, 1, 1, 1], [0], [0]>} : vector<8x8x4xbf16>, vector<8x8x4xbf16>, vector<8x8x8xf32> -> vector<8x8x8xf32>
    "tpu.trace_stop"() : () -> ()
    %55 = vector.shape_cast %54 : vector<8x8x8xf32> to vector<4x2x8x8xf32>
    %56 = vector.shape_cast %14 : vector<2x1x8xf32> to vector<1x2x1x8xf32>
    %57 = vector.broadcast %56 : vector<1x2x1x8xf32> to vector<4x2x8x8xf32>
    %58 = arith.addf %55, %57 : vector<4x2x8x8xf32>
    %cst_12 = arith.constant dense<0xFF800000> : vector<4x2x8xf32>
    %59 = vector.multi_reduction <maximumf>, %58, %cst_12 [3] : vector<4x2x8x8xf32> to vector<4x2x8xf32>
    %60 = vector.shape_cast %59 : vector<4x2x8xf32> to vector<4x2x8x1xf32>
    %61 = vector.broadcast %60 : vector<4x2x8x1xf32> to vector<4x2x8x8xf32>
    %62 = arith.subf %58, %61 : vector<4x2x8x8xf32>
    %63 = math.exp %62 : vector<4x2x8x8xf32>
    %cst_13 = arith.constant dense<0.000000e+00> : vector<4x2x8xf32>
    %64 = vector.multi_reduction <add>, %63, %cst_13 [3] : vector<4x2x8x8xf32> to vector<4x2x8xf32>
    %65 = vector.shape_cast %64 : vector<4x2x8xf32> to vector<4x2x8x1xf32>
    %66 = tpu.reciprocal %65 {approx = true} : vector<4x2x8x1xf32> -> vector<4x2x8x1xf32>
    %67 = vector.broadcast %66 : vector<4x2x8x1xf32> to vector<4x2x8x8xf32>
    %68 = arith.mulf %63, %67 : vector<4x2x8x8xf32>
    %69 = vector.shape_cast %68 : vector<4x2x8x8xf32> to vector<8x8x8xf32>
    %70 = arith.truncf %69 : vector<8x8x8xf32> to vector<8x8x8xbf16>
    "tpu.trace_start"() <{level = 10 : i32, message = "bqk,bkd->bqd"}> : () -> ()
    %cst_14 = arith.constant dense<0.000000e+00> : vector<8x8x4xf32>
    %71 = tpu.matmul %70, %53, %cst_14 {dimension_numbers = #tpu.dot_dimension_numbers<[2], [1], [1], [2], [0, 0, 0, 1, 1, 2], [0], [0]>} : vector<8x8x8xbf16>, vector<8x8x4xbf16>, vector<8x8x4xf32> -> vector<8x8x4xf32>
    "tpu.trace_stop"() : () -> ()
    %72 = vector.shape_cast %71 : vector<8x8x4xf32> to vector<4x16x4xf32>
    %73 = arith.truncf %72 : vector<4x16x4xf32> to vector<4x16x4xbf16>
    %c0_15 = arith.constant 0 : index
    %c0_16 = arith.constant 0 : index
    %c0_17 = arith.constant 0 : index
    %74 = vector.load %arg3[%c0_15, %c0_16, %c0_17] : memref<4x4x32xbf16, #tpu.memory_space<vmem>>, vector<4x4x32xbf16>
    "tpu.trace_start"() <{level = 10 : i32, message = "hrd,hdm->hrm"}> : () -> ()
    %cst_18 = arith.constant dense<0.000000e+00> : vector<4x16x32xf32>
    %75 = tpu.matmul %73, %74, %cst_18 {dimension_numbers = #tpu.dot_dimension_numbers<[2], [1], [1], [2], [0, 0, 0, 1, 1, 2], [0], [0]>} : vector<4x16x4xbf16>, vector<4x4x32xbf16>, vector<4x16x32xf32> -> vector<4x16x32xf32>
    "tpu.trace_stop"() : () -> ()
    %cst_19 = arith.constant dense<0.000000e+00> : vector<16x32xf32>
    %76 = vector.multi_reduction <add>, %75, %cst_19 [0] : vector<4x16x32xf32> to vector<16x32xf32>
    %77 = vector.broadcast %4 : vector<1x32xf32> to vector<16x32xf32>
    %78 = arith.addf %76, %77 : vector<16x32xf32>
    %79 = arith.addf %78, %1 : vector<16x32xf32>
    %cst_20 = arith.constant dense<0.000000e+00> : vector<16xf32>
    %80 = vector.multi_reduction <add>, %79, %cst_20 [1] : vector<16x32xf32> to vector<16xf32>
    %81 = vector.shape_cast %80 : vector<16xf32> to vector<16x1xf32>
    %cst_21 = arith.constant 3.200000e+01 : f32
    %82 = vector.broadcast %cst_21 : f32 to vector<16x1xf32>
    %83 = arith.divf %81, %82 : vector<16x1xf32>
    %84 = vector.broadcast %83 : vector<16x1xf32> to vector<16x32xf32>
    %85 = arith.subf %79, %84 : vector<16x32xf32>
    %86 = arith.mulf %85, %85 : vector<16x32xf32>
    %cst_22 = arith.constant dense<0.000000e+00> : vector<16xf32>
    %87 = vector.multi_reduction <add>, %86, %cst_22 [1] : vector<16x32xf32> to vector<16xf32>
    %88 = vector.shape_cast %87 : vector<16xf32> to vector<16x1xf32>
    %cst_23 = arith.constant 3.200000e+01 : f32
    %89 = vector.broadcast %cst_23 : f32 to vector<16x1xf32>
    %90 = arith.divf %88, %89 : vector<16x1xf32>
    %91 = vector.broadcast %83 : vector<16x1xf32> to vector<16x32xf32>
    %92 = arith.subf %79, %91 : vector<16x32xf32>
    %cst_24 = arith.constant 9.99999997E-7 : f32
    %93 = vector.broadcast %cst_24 : f32 to vector<16x1xf32>
    %94 = arith.addf %90, %93 : vector<16x1xf32>
    %95 = math.rsqrt %94 : vector<16x1xf32>
    %96 = vector.broadcast %95 : vector<16x1xf32> to vector<16x32xf32>
    %97 = arith.mulf %92, %96 : vector<16x32xf32>
    %98 = vector.broadcast %5 : vector<1x32xf32> to vector<16x32xf32>
    %99 = arith.mulf %97, %98 : vector<16x32xf32>
    %100 = vector.broadcast %6 : vector<1x32xf32> to vector<16x32xf32>
    %101 = arith.addf %99, %100 : vector<16x32xf32>
    %102 = arith.truncf %101 : vector<16x32xf32> to vector<16x32xbf16>
    %c0_25 = arith.constant 0 : index
    %c0_26 = arith.constant 0 : index
    %103 = vector.load %arg4[%c0_25, %c0_26] : memref<32x64xbf16, #tpu.memory_space<vmem>>, vector<32x64xbf16>
    %cst_27 = arith.constant dense<0.000000e+00> : vector<16x64xf32>
    %104 = tpu.matmul %102, %103, %cst_27 {dimension_numbers = #tpu.dot_dimension_numbers<[1], [0], [0], [1], [0, 0, 1, 1], [], []>} : vector<16x32xbf16>, vector<32x64xbf16>, vector<16x64xf32> -> vector<16x64xf32>
    %105 = vector.broadcast %7 : vector<1x64xf32> to vector<16x64xf32>
    %106 = arith.addf %104, %105 : vector<16x64xf32>
    %cst_28 = arith.constant 0.000000e+00 : f32
    %107 = vector.broadcast %cst_28 : f32 to vector<16x64xf32>
    %108 = arith.maximumf %106, %107 : vector<16x64xf32>
    %109 = arith.truncf %108 : vector<16x64xf32> to vector<16x64xbf16>
    %c0_29 = arith.constant 0 : index
    %c0_30 = arith.constant 0 : index
    %110 = vector.load %arg5[%c0_29, %c0_30] : memref<64x32xbf16, #tpu.memory_space<vmem>>, vector<64x32xbf16>
    %cst_31 = arith.constant dense<0.000000e+00> : vector<16x32xf32>
    %111 = tpu.matmul %109, %110, %cst_31 {dimension_numbers = #tpu.dot_dimension_numbers<[1], [0], [0], [1], [0, 0, 1, 1], [], []>} : vector<16x64xbf16>, vector<64x32xbf16>, vector<16x32xf32> -> vector<16x32xf32>
    %112 = vector.broadcast %8 : vector<1x32xf32> to vector<16x32xf32>
    %113 = arith.addf %111, %112 : vector<16x32xf32>
    %114 = arith.addf %113, %79 : vector<16x32xf32>
    %115 = vector.shape_cast %114 : vector<16x32xf32> to vector<2x8x32xf32>
    %c0_32 = arith.constant 0 : index
    %c0_33 = arith.constant 0 : index
    %c0_34 = arith.constant 0 : index
    %116 = vector.load %arg7[%c0_32, %c0_33, %c0_34] : memref<2x8x32xf32, #tpu.memory_space<vmem>>, vector<2x8x32xf32>
    tpu.vector_store %arg7[%c0_32, %c0_33, %c0_34], %115 {strides = array<i32>} : memref<2x8x32xf32, #tpu.memory_space<vmem>>, vector<2x8x32xf32>,
    return
  }
}

</mosaic_0001>

<bundles_post_ra>
// kernel: transformer_encoder_layer.1
= control target key start
LH: loop header
LB: loop body
LE: loop exit
PB: predicated region body
PF: predicated region fallthrough
CT: control target
= control target key end

     0   :  { %12 = vsyncpa [#allocation3], 0  ;;  %s1400_s0 = inlined_call_operand.vmem [shape: f32[2,8,32], index: 0, kind: input, shape index: {}]   ;;  %s1401_s1 = inlined_call_operand.hbm [shape: s32[2,1,8], index: 1, kind: input, shape index: {}]   ;;  %s1402_s2 = inlined_call_operand.vmem [shape: bf16[32,48], index: 2, kind: input, shape index: {}]   ;;  %s1403_s3 = inlined_call_operand.hbm [shape: bf16[4,4,32], index: 3, kind: input, shape index: {}]   ;;  %s1404_s4 = inlined_call_operand.vmem [shape: bf16[32,64], index: 4, kind: input, shape index: {}]   ;;  %s1405_s5 = inlined_call_operand.vmem [shape: bf16[64,32], index: 5, kind: input, shape index: {}]   ;;  %s1406_s6 = inlined_call_operand.hbm [shape: f32[6,64], index: 6, kind: input, shape index: {}]   ;;  %s1407_s7 = inlined_call_operand.hbm [shape: f32[2,8,32], index: 7, kind: output, shape index: {}]  }
   0x1   :  { %13 = vsyncpa [#allocation6], 0  ;;  %s36_s26 = sshll.u32 %s1403_s3, 4  ;;  %s37_s26 = int_to_ptr.hbm [resolvable:$true] %s36_s26 }
   0x2   :  { %14 = vsyncpa [#allocation4], 0  ;;  %s1141_s27 = smov [#allocation5]   ;;  %s21_s8 = sshll.u32 %s1401_s1, 4  ;;  %s22_s8 = int_to_ptr.hbm [resolvable:$true] %s21_s8 }
   0x3   :  { %s38_s28 = sshll.u32 %s1141_s27, 4  ;;  %s1142_s9 = smov 32   ;;  %s39_s28 = int_to_ptr.vmem [resolvable:$true] %s38_s28 }
   0x4   :  { %s1143_s10 = smov 2   ;;  %s1144_s11 = smov [#allocation2]  }
   0x5   :  { %44 = dma.hbm_to_vmem [thread:$0]  %s37_s26, 128, %s39_s28, [#allocation6], %s1142_s9, %s1142_s9, %s1143_s10  }
   0x6   :  { %s23_s12 = sshll.u32 %s1144_s11, 4  ;;  %s1145_s13 = smov 16   ;;  %s24_s12 = int_to_ptr.vmem [resolvable:$true] %s23_s12 }
   0x7   :  { %s1146_s14 = smov 1   ;;  %s54_s16 = sshll.u32 %s1406_s6, 4  ;;  %s55_s16 = int_to_ptr.hbm [resolvable:$true] %s54_s16 }
   0x8   :  { %29 = dma.hbm_to_vmem [thread:$0]  %s22_s8, 32, %s24_s12, [#allocation3], %s1145_s13, %s1145_s13, %s1146_s14  }
   0x9   :  { %s1147_s17 = smov [#allocation7]  }
   0xa   :  { %s56_s18 = sshll.u32 %s1147_s17, 4  ;;  %s57_s18 = int_to_ptr.vmem [resolvable:$true] %s56_s18 }
   0xb   :  { %59 = dma.hbm_to_vmem [thread:$0]  %s55_s16, 128, %s57_s18, [#allocation6]  }
   0xc   :  { %1135 = dma.done.wait [#allocation3], 32  }
   0xd   :  { %1136 = vsyncadd [#allocation3], 4294967264 }
   0xe   :  { %1137 = dma.done.wait [#allocation6], 256  }
   0xf   :  { %1138 = vsyncadd [#allocation6], 4294967040  ;;  %v977_v0 = vld [vmem:[%s1402_s2 + $0x8] sm:$0xff]  ;;  %v976_v1 = vld [vmem:[%s1402_s2] sm:$0xff]  ;;  %vm100_vm0 = vcmask 261120   ;;  %s1148_s2 = smov 120  }
  0x10   :  { %110 = vmatpush.bf16.msra.mxu0 %v977_v0  ;;  %v1216_v2 = vld [vmem:[%s1400_s0] sm:$0xff]  ;;  %v1221_v3 = vld [vmem:[%s1400_s0 + $0x8] sm:$0xff]  ;;  %s1149_s25 = smov 124   ;;  %s1150_s0 = smov 116   ;;  %vm151_vm1 = vcmask 31744   ;;  %v1153_v47 = vmov 0.0  }
  0x11   :  { %v82_v4 = vpack.c.bf16 %v1221_v3, %v1216_v2  ;;  %v1226_v5 = vld [vmem:[#allocation7] sm:$0x3f]  ;;  %s1151_s26 = smov 112   ;;  %s1152_s27 = smov 96   ;;  %v76_v45 = vld [vmem:[#allocation2] sm:$0x1] }
  0x12   :  { %v87_v6 = vperm.slane %v1226_v5, 0  ;;  %vm78_vm2 = vcmp.gt.s32.totalorder %v76_v45, 0  ;;  %vm353_vm3 = vcmask 64512   ;;  %vm455_vm4 = vcmask 1043456   ;;  %s907_s18 = sshll.u32 %s1407_s7, 4  ;;  %s1156_s1 = smov 128   ;;  %s908_s18 = int_to_ptr.hbm [resolvable:$true] %s907_s18 }
  0x13   :  { %v80_v48 = vsel %vm78_vm2, -1e+18, %v1153_v47  ;;  %vm639_vm6 = vcmask 1041408   ;;  %vm879_vm14 = vcmask 523264   ;;  %s1157_s19 = smov 8  }
  0x14   :  { %111 = vmatpush.bf16.msra.mxu0 %v976_v1  ;;  %v1268_v52 = vperm.slane %v80_v48, 0 }
  0x17   :  { %929 = vmatmul.msk.bf16.vlgmr.msra.gmra.mxu0 %vm100_vm0, %v82_v4  ;;  %v77_v4 = vld [vmem:[#allocation2 + $0x1] sm:$0x1] }
  0x18   :  { %vm79_vm5 = vcmp.gt.s32.totalorder %v77_v4, 0 }
  0x94   :  { %v113_v7 = vpop.f32.mrf.mxu0 }
  0x95   :  { %v114_v8 = vadd.f32 %v113_v7, %v87_v6  ;;  %v81_v7 = vsel %vm79_vm5, -1e+18, %v1153_v47 }
  0x97   :  { %126 = vrot.lane.b32.xlu2 %v114_v8, %s1148_s2  ;;  %120 = vrot.lane.b32.xlu0 %v114_v8, %s1149_s25  ;;  %v138_v11 = vpack.c.bf16 %v114_v8, %v114_v8 }
  0x99   :  { %v147_v13 = vunpack.c.l.b16 %v138_v11 }
  0x9b   :  { %v1229_v15 = vpack.c.b16 %v147_v13, %v147_v13 }
  0x9c   :  { %v115_v9 = vpop.f32.mrf.mxu0 }
  0x9d   :  { %v116_v10 = vadd.f32 %v115_v9, %v87_v6 }
  0x9f   :  { %122 = vrot.lane.b32.xlu1 %v116_v10, %s1149_s25  ;;  %134 = vrot.lane.b32.xlu2 %v116_v10, %s1150_s0  ;;  %v139_v12 = vpack.c.bf16 %v116_v10, %v116_v10 }
  0xa0   :  { %128 = vrot.lane.b32.xlu0 %v116_v10, %s1148_s2 }
  0xa1   :  { %v172_v14 = vunpack.c.l.b16 %v139_v12 }
  0xa3   :  { %v1231_v16 = vpack.c.b16 %v172_v14, %v172_v14 }
  0xa7   :  { %132 = vrot.lane.b32.xlu1 %v114_v8, %s1150_s0  ;;  %149 = vrot.lane.b32.xlu2 %v1229_v15, %s1151_s26  ;;  %v342_v8 = vperm.slane %v81_v7, 0 }
  0xa8   :  { %174 = vrot.lane.b32.xlu0 %v1231_v16, %s1151_s26 }
  0xf1   :  { %v127_v17 = vpop.permute.xlu2 %126 }
  0xf2   :  { %v142_v33 = vpack.c.bf16 %v127_v17, %v127_v17 }
  0xf4   :  { %v244_v39 = vunpack.c.l.b16 %v142_v33 }
  0xf6   :  { %v1256_v44 = vpack.c.b16 %v244_v39, %v244_v39 }
  0xf9   :  { %v135_v18 = vpop.permute.xlu2 %134 }
  0xfa   :  { %v1240_v31 = vpack.c.bf16 %v135_v18, %v135_v18 }
  0xfc   :  { %v316_v36 = vunpack.c.l.b16 %v1240_v31 }
  0xfe   :  { %v1252_v42 = vpack.c.b16 %v316_v36, %v316_v36 }
 0x101   :  { %v150_v19 = vpop.permute.xlu2 %149 }
 0x102   :  { %v156_v20 = vsel %vm151_vm1, %v150_v19, 0 }
 0x103   :  { %165 = vmatpush.bf16.xpose.msra.mxu1 %v156_v20 }
 0x109   :  { %v121_v21 = vpop.permute.xlu0 %120 }
 0x10a   :  { %v140_v22 = vpack.c.bf16 %v121_v21, %v121_v21  ;;  %930 = vmatmul.msk.bf16.vlgmr.msra.gmra.mxu1 %vm151_vm1, %v138_v11 }
 0x10c   :  { %v196_v23 = vunpack.c.l.b16 %v140_v22 }
 0x10e   :  { %v197_v24 = vpack.c.b16 %v196_v23, %v196_v23 }
 0x110   :  { %198 = vrot.lane.b32.xlu1 %v197_v24, %s1151_s26 }
 0x111   :  { %v123_v25 = vpop.permute.xlu1 %122 }
 0x112   :  { %v141_v26 = vpack.c.bf16 %v123_v25, %v123_v25  ;;  %v129_v27 = vpop.permute.xlu0 %128 }
 0x113   :  { %v143_v28 = vpack.c.bf16 %v129_v27, %v129_v27 }
 0x114   :  { %v220_v29 = vunpack.c.l.b16 %v141_v26 }
 0x115   :  { %v268_v30 = vunpack.c.l.b16 %v143_v28 }
 0x116   :  { %v1242_v32 = vpack.c.b16 %v220_v29, %v220_v29 }
 0x117   :  { %v1244_v34 = vpack.c.b16 %v268_v30, %v268_v30 }
 0x118   :  { %222 = vrot.lane.b32.xlu1 %v1242_v32, %s1151_s26 }
 0x119   :  { %270 = vrot.lane.b32.xlu0 %v1244_v34, %s1151_s26  ;;  %v133_v35 = vpop.permute.xlu1 %132 }
 0x11a   :  { %v144_v37 = vpack.c.bf16 %v133_v35, %v133_v35  ;;  %v175_v38 = vpop.permute.xlu0 %174 }
 0x11b   :  { %v180_v40 = vsel %vm151_vm1, %v175_v38, 0 }
 0x11c   :  { %v292_v41 = vunpack.c.l.b16 %v144_v37  ;;  %189 = vmatpush.bf16.xpose.msra.mxu2 %v180_v40 }
 0x11e   :  { %v1254_v43 = vpack.c.b16 %v292_v41, %v292_v41 }
 0x120   :  { %318 = vrot.lane.b32.xlu1 %v1252_v42, %s1151_s26  ;;  %294 = vrot.lane.b32.xlu2 %v1254_v43, %s1151_s26 }
 0x121   :  { %246 = vrot.lane.b32.xlu0 %v1256_v44, %s1151_s26 }
 0x123   :  { %931 = vmatmul.msk.bf16.vlgmr.msra.gmra.mxu2 %vm151_vm1, %v139_v12 }
 0x128   :  { %493 = vrot.lane.b32.xlu1 %v197_v24, %s1152_s27 }
 0x17a   :  { %v295_v46 = vpop.permute.xlu2 %294 }
 0x17b   :  { %v300_v51 = vsel %vm151_vm1, %v295_v46, 0 }
 0x182   :  { %v199_v49 = vpop.permute.xlu1 %198 }
 0x183   :  { %v204_v50 = vsel %vm151_vm1, %v199_v49, 0 }
 0x184   :  { %213 = vmatpush.bf16.xpose.msra.mxu3 %v204_v50 }
 0x187   :  { %v167_v53 = vpop.f32.mrf.mxu1 }
 0x188   :  { %v345_v54 = vadd.f32 %v1268_v52, %v167_v53 }
 0x18a   :  { %v223_v55 = vpop.permute.xlu1 %222  ;;  %v354_v56 = vsel %vm353_vm3, %v345_v54, -inf }
 0x18b   :  { %v271_v57 = vpop.permute.xlu0 %270  ;;  %932 = vmatmul.msk.bf16.vlgmr.msra.gmra.mxu3 %vm151_vm1, %v140_v22  ;;  %355 = vmax.xlane.f32.xlu0 %v354_v56  ;;  %v228_v58 = vsel %vm151_vm1, %v223_v55, 0 }
 0x18c   :  { %309 = vmatpush.bf16.xpose.msrb.mxu3 %v300_v51  ;;  %237 = vmatpush.bf16.xpose.msrb.mxu0 %v228_v58  ;;  %v276_v59 = vsel %vm151_vm1, %v271_v57, 0 }
 0x18d   :  { %285 = vmatpush.bf16.xpose.msrb.mxu2 %v276_v59 }
 0x18f   :  { %v169_v60 = vpop.f32.mrf.mxu1 }
 0x192   :  { %v319_v61 = vpop.permute.xlu1 %318 }
 0x193   :  { %v324_v62 = vsel %vm151_vm1, %v319_v61, 0  ;;  %v247_v63 = vpop.permute.xlu0 %246  ;;  %933 = vmatmul.msk.bf16.vlgmr.msrb.gmra.mxu0 %vm151_vm1, %v141_v26 }
 0x194   :  { %935 = vmatmul.msk.bf16.vlgmr.msrb.gmra.mxu2 %vm151_vm1, %v143_v28  ;;  %v252_v0 = vsel %vm151_vm1, %v247_v63, 0  ;;  %333 = vmatpush.bf16.xpose.msra.mxu0 %v324_v62 }
 0x195   :  { %261 = vmatpush.bf16.xpose.msrb.mxu1 %v252_v0 }
 0x19a   :  { %v494_v1 = vpop.permute.xlu1 %493 }
 0x19b   :  { %v499_v6 = vsel %vm455_vm4, %v494_v1, 0  ;;  %936 = vmatmul.msk.bf16.vlgmr.msrb.gmra.mxu3 %vm151_vm1, %v144_v37 }
 0x19c   :  { %934 = vmatmul.msk.bf16.vlgmr.msrb.gmra.mxu1 %vm151_vm1, %v142_v33  ;;  %508 = vmatpush.bf16.msra.mxu3 %v499_v6 }
 0x1a3   :  { %937 = vmatmul.msk.bf16.vlgmr.msra.gmra.mxu0 %vm151_vm1, %v1240_v31 }
 0x1a6   :  { %v191_v9 = vpop.f32.mrf.mxu2 }
 0x1a7   :  { %v346_v10 = vadd.f32 %v342_v8, %v191_v9 }
 0x1a9   :  { %v357_v11 = vsel %vm353_vm3, %v346_v10, -inf }
 0x1aa   :  { %358 = vmax.xlane.f32.xlu2 %v357_v11 }
 0x1ae   :  { %v193_v12 = vpop.f32.mrf.mxu2 }
 0x1c2   :  { %450 = vrot.lane.b32.xlu2 %v1229_v15, %s1152_s27 }
 0x1fe   :  { %v356_v13 = vpop.xlane.xlu0 %355 }
 0x1ff   :  { %v378_v14 = vsub.f32 %v345_v54, %v356_v13 }
 0x201   :  { %v386_v17 = vmul.f32 1.442695, %v378_v14 }
 0x203   :  { %1001 = vpow2.f32 %v386_v17 }
 0x209   :  { %v1002_v24 = vpop.eup %1001 }
 0x20a   :  { %v402_v29 = vsel %vm353_vm3, %v1002_v24, 0.0 }
 0x20e   :  { %v215_v18 = vpop.f32.mrf.mxu3 }
 0x20f   :  { %v347_v19 = vadd.f32 %v1268_v52, %v215_v18 }
 0x210   :  { %v239_v20 = vpop.f32.mrf.mxu0 }
 0x211   :  { %v348_v21 = vadd.f32 %v342_v8, %v239_v20  ;;  %v360_v22 = vsel %vm353_vm3, %v347_v19, -inf }
 0x212   :  { %361 = vmax.xlane.f32.xlu1 %v360_v22 }
 0x213   :  { %v363_v23 = vsel %vm353_vm3, %v348_v21, -inf }
 0x214   :  { %364 = vmax.xlane.f32.xlu2 %v363_v23 }
 0x216   :  { %v217_v25 = vpop.f32.mrf.mxu3 }
 0x217   :  { %v287_v26 = vpop.f32.mrf.mxu2 }
 0x218   :  { %v350_v27 = vadd.f32 %v342_v8, %v287_v26  ;;  %v241_v15 = vpop.f32.mrf.mxu0 }
 0x219   :  { %v263_v28 = vpop.f32.mrf.mxu1 }
 0x21a   :  { %v349_v30 = vadd.f32 %v1268_v52, %v263_v28  ;;  %403 = vadd.xlane.f32.xlu1 %v402_v29  ;;  %v369_v31 = vsel %vm353_vm3, %v350_v27, -inf }
 0x21c   :  { %370 = vmax.xlane.f32.xlu2 %v369_v31  ;;  %v366_v33 = vsel %vm353_vm3, %v349_v30, -inf }
 0x21d   :  { %367 = vmax.xlane.f32.xlu0 %v366_v33  ;;  %v359_v35 = vpop.xlane.xlu2 %358 }
 0x21e   :  { %v311_v36 = vpop.f32.mrf.mxu3  ;;  %v379_v49 = vsub.f32 %v346_v10, %v359_v35 }
 0x21f   :  { %v289_v37 = vpop.f32.mrf.mxu2  ;;  %v351_v38 = vadd.f32 %v1268_v52, %v311_v36 }
 0x220   :  { %v335_v39 = vpop.f32.mrf.mxu0  ;;  %v388_v50 = vmul.f32 1.442695, %v379_v49 }
 0x221   :  { %v265_v40 = vpop.f32.mrf.mxu1  ;;  %v372_v41 = vsel %vm353_vm3, %v351_v38, -inf  ;;  %v352_v52 = vadd.f32 %v342_v8, %v335_v39 }
 0x222   :  { %373 = vmax.xlane.f32.xlu1 %v372_v41  ;;  %1003 = vpow2.f32 %v388_v50 }
 0x223   :  { %v375_v54 = vsel %vm353_vm3, %v352_v52, -inf }
 0x225   :  { %v451_v45 = vpop.permute.xlu2 %450 }
 0x226   :  { %v457_v46 = vsel %vm455_vm4, %v451_v45, 0  ;;  %v313_v47 = vpop.f32.mrf.mxu3 }
 0x227   :  { %466 = vmatpush.bf16.msra.mxu1 %v457_v46 }
 0x228   :  { %v337_v48 = vpop.f32.mrf.mxu0  ;;  %v1301_v51 = vpop.eup %1003 }
 0x229   :  { %v405_v53 = vsel %vm353_vm3, %v1301_v51, 0.0 }
 0x231   :  { %472 = vrot.lane.b32.xlu0 %v1231_v16, %s1152_s27 }
 0x234   :  { %514 = vrot.lane.b32.xlu2 %v1242_v32, %s1152_s27 }
 0x25b   :  { %406 = vadd.xlane.f32.xlu0 %v405_v53 }
 0x25d   :  { %376 = vmax.xlane.f32.xlu2 %v375_v54 }
 0x285   :  { %v362_v55 = vpop.xlane.xlu1 %361 }
 0x286   :  { %v380_v56 = vsub.f32 %v347_v19, %v362_v55 }
 0x287   :  { %v365_v57 = vpop.xlane.xlu2 %364 }
 0x288   :  { %v390_v16 = vmul.f32 1.442695, %v380_v56  ;;  %v381_v58 = vsub.f32 %v348_v21, %v365_v57 }
 0x28a   :  { %1005 = vpow2.f32 %v390_v16  ;;  %v392_v32 = vmul.f32 1.442695, %v381_v58 }
 0x28c   :  { %1007 = vpow2.f32 %v392_v32 }
 0x28d   :  { %v404_v59 = vpop.xlane.xlu1 %403 }
 0x28e   :  { %1009 = vrcp.f32 %v404_v59 }
 0x28f   :  { %v371_v60 = vpop.xlane.xlu2 %370 }
 0x290   :  { %v1006_v61 = vpop.eup %1005  ;;  %v368_v62 = vpop.xlane.xlu0 %367  ;;  %v383_v63 = vsub.f32 %v350_v27, %v371_v60 }
 0x291   :  { %v382_v0 = vsub.f32 %v349_v30, %v368_v62  ;;  %v408_v1 = vsel %vm353_vm3, %v1006_v61, 0.0 }
 0x292   :  { %v1008_v4 = vpop.eup %1007  ;;  %v396_v6 = vmul.f32 1.442695, %v383_v63  ;;  %409 = vadd.xlane.f32.xlu2 %v408_v1 }
 0x293   :  { %v394_v7 = vmul.f32 1.442695, %v382_v0  ;;  %v411_v8 = vsel %vm353_vm3, %v1008_v4, 0.0  ;;  %v627_v0 = vld [vmem:[#allocation5] sm:$0x3] }
 0x294   :  { %v1010_v9 = vpop.eup %1009  ;;  %1011 = vpow2.f32 %v396_v6  ;;  %412 = vadd.xlane.f32.xlu1 %v411_v8  ;;  %v641_v1 = vsel %vm639_vm6, %v627_v0, 0 }
 0x295   :  { %v434_v10 = vmul.f32 %v1010_v9, %v1002_v24  ;;  %1013 = vpow2.f32 %v394_v7  ;;  %v374_v11 = vpop.xlane.xlu1 %373 }
 0x296   :  { %v384_v12 = vsub.f32 %v351_v38, %v374_v11 }
 0x297   :  { %v442_v13 = vpack.c.bf16 %v434_v10, %v434_v10  ;;  %v515_v14 = vpop.permute.xlu2 %514 }
 0x298   :  { %v398_v17 = vmul.f32 1.442695, %v384_v12  ;;  %v520_v18 = vsel %vm455_vm4, %v515_v14, 0 }
 0x299   :  { %938 = vmatmul.msk.bf16.vlgmr.msra.gmra.mxu1 %vm353_vm3, %v442_v13  ;;  %529 = vmatpush.bf16.msrb.mxu0 %v520_v18  ;;  %v628_v18 = vld [vmem:[#allocation5 + $0x2] sm:$0x3] }
 0x29a   :  { %v1310_v19 = vpop.eup %1011  ;;  %1015 = vpow2.f32 %v398_v17 }
 0x29b   :  { %v1014_v20 = vpop.eup %1013  ;;  %v417_v21 = vsel %vm353_vm3, %v1310_v19, 0.0 }
 0x29c   :  { %v414_v22 = vsel %vm353_vm3, %v1014_v20, 0.0  ;;  %418 = vadd.xlane.f32.xlu1 %v417_v21  ;;  %v629_v21 = vld [vmem:[#allocation5 + $0x4] sm:$0x3] }
 0x29d   :  { %415 = vadd.xlane.f32.xlu0 %v414_v22 }
 0x2a0   :  { %v1016_v23 = vpop.eup %1015 }
 0x2a1   :  { %v420_v24 = vsel %vm353_vm3, %v1016_v23, 0.0 }
 0x2a2   :  { %421 = vadd.xlane.f32.xlu2 %v420_v24 }
 0x2a3   :  { %v473_v25 = vpop.permute.xlu0 %472 }
 0x2a4   :  { %v478_v26 = vsel %vm455_vm4, %v473_v25, 0 }
 0x2a5   :  { %487 = vmatpush.bf16.msra.mxu2 %v478_v26 }
 0x2b1   :  { %535 = vrot.lane.b32.xlu0 %v1256_v44, %s1152_s27 }
 0x2b5   :  { %556 = vrot.lane.b32.xlu1 %v1244_v34, %s1152_s27 }
 0x2b9   :  { %598 = vrot.lane.b32.xlu0 %v1252_v42, %s1152_s27 }
 0x2ba   :  { %577 = vrot.lane.b32.xlu2 %v1254_v43, %s1152_s27 }
 0x2ce   :  { %v407_v27 = vpop.xlane.xlu0 %406 }
 0x2cf   :  { %1017 = vrcp.f32 %v407_v27 }
 0x2d0   :  { %v377_v15 = vpop.xlane.xlu2 %376 }
 0x2d1   :  { %v385_v28 = vsub.f32 %v352_v52, %v377_v15 }
 0x2d3   :  { %v400_v29 = vmul.f32 1.442695, %v385_v28 }
 0x2d5   :  { %v1018_v30 = vpop.eup %1017  ;;  %1019 = vpow2.f32 %v400_v29 }
 0x2d6   :  { %v435_v31 = vmul.f32 %v1018_v30, %v1301_v51 }
 0x2d8   :  { %v443_v33 = vpack.c.bf16 %v435_v31, %v435_v31 }
 0x2da   :  { %939 = vmatmul.msk.bf16.vlgmr.msra.gmra.mxu2 %vm353_vm3, %v443_v33 }
 0x2db   :  { %v1020_v44 = vpop.eup %1019 }
 0x2dc   :  { %v423_v34 = vsel %vm353_vm3, %v1020_v44, 0.0 }
 0x2df   :  { %424 = vadd.xlane.f32.xlu1 %v423_v34 }
 0x305   :  { %v410_v42 = vpop.xlane.xlu2 %409 }
 0x306   :  { %1021 = vrcp.f32 %v410_v42 }
 0x307   :  { %v413_v35 = vpop.xlane.xlu1 %412 }
 0x308   :  { %1023 = vrcp.f32 %v413_v35 }
 0x30c   :  { %v1022_v43 = vpop.eup %1021 }
 0x30d   :  { %v436_v36 = vmul.f32 %v1022_v43, %v1006_v61 }
 0x30e   :  { %v1024_v37 = vpop.eup %1023 }
 0x30f   :  { %v444_v38 = vpack.c.bf16 %v436_v36, %v436_v36  ;;  %v437_v39 = vmul.f32 %v1024_v37, %v1008_v4  ;;  %v419_v47 = vpop.xlane.xlu1 %418 }
 0x310   :  { %v416_v45 = vpop.xlane.xlu0 %415 }
 0x311   :  { %v445_v40 = vpack.c.bf16 %v437_v39, %v437_v39  ;;  %940 = vmatmul.msk.bf16.vlgmr.msra.gmra.mxu3 %vm353_vm3, %v444_v38  ;;  %v630_v39 = vld [vmem:[#allocation5 + $0x6] sm:$0x3] }
 0x313   :  { %941 = vmatmul.msk.bf16.vlgmr.msrb.gmra.mxu0 %vm353_vm3, %v445_v40  ;;  %v716_v40 = vsel %vm639_vm6, %v630_v39, 0 }
 0x315   :  { %v422_v41 = vpop.xlane.xlu2 %421 }
 0x316   :  { %1025 = vrcp.f32 %v422_v41  ;;  %v468_v46 = vpop.f32.mrf.mxu1 }
 0x317   :  { %1027 = vrcp.f32 %v416_v45  ;;  %v619_v8 = vpack.c.bf16 %v468_v46, %v468_v46 }
 0x318   :  { %1029 = vrcp.f32 %v419_v47 }
 0x319   :  { %v633_v12 = vunpack.c.l.b16 %v619_v8 }
 0x31c   :  { %v1026_v48 = vpop.eup %1025 }
 0x31d   :  { %v440_v49 = vmul.f32 %v1026_v48, %v1016_v23  ;;  %v578_v50 = vpop.permute.xlu2 %577  ;;  %v1028_v53 = vpop.eup %1027  ;;  %v691_v23 = vsel %vm639_vm6, %v629_v21, 0 }
 0x31e   :  { %v583_v51 = vsel %vm455_vm4, %v578_v50, 0  ;;  %v470_v52 = vpop.f32.mrf.mxu1  ;;  %v438_v55 = vmul.f32 %v1028_v53, %v1014_v20  ;;  %v1030_v56 = vpop.eup %1029 }
 0x31f   :  { %v448_v54 = vpack.c.bf16 %v440_v49, %v440_v49  ;;  %592 = vmatpush.bf16.msrb.mxu3 %v583_v51  ;;  %v439_v32 = vmul.f32 %v1030_v56, %v1310_v19  ;;  %v666_v19 = vsel %vm639_vm6, %v628_v18, 0 }
 0x320   :  { %v446_v58 = vpack.c.bf16 %v438_v55, %v438_v55 }
 0x321   :  { %v447_v61 = vpack.c.bf16 %v439_v32, %v439_v32 }
 0x322   :  { %944 = vmatmul.msk.bf16.vlgmr.msrb.gmra.mxu3 %vm353_vm3, %v448_v54 }
 0x323   :  { %v536_v57 = vpop.permute.xlu0 %535  ;;  %700 = vmatpush.bf16.msra.mxu3 %v691_v23 }
 0x324   :  { %v541_v16 = vsel %vm455_vm4, %v536_v57, 0 }
 0x325   :  { %550 = vmatpush.bf16.msrb.mxu1 %v541_v16 }
 0x327   :  { %v557_v59 = vpop.permute.xlu1 %556 }
 0x328   :  { %942 = vmatmul.msk.bf16.vlgmr.msrb.gmra.mxu1 %vm353_vm3, %v446_v58  ;;  %v562_v60 = vsel %vm455_vm4, %v557_v59, 0  ;;  %v746_v59 = vperm.slane %v1226_v5, 1 }
 0x329   :  { %571 = vmatpush.bf16.msrb.mxu2 %v562_v60  ;;  %650 = vmatpush.bf16.msra.mxu1 %v641_v1 }
 0x32b   :  { %v599_v62 = vpop.permute.xlu0 %598 }
 0x32c   :  { %v604_v63 = vsel %vm455_vm4, %v599_v62, 0  ;;  %943 = vmatmul.msk.bf16.vlgmr.msrb.gmra.mxu2 %vm353_vm3, %v447_v61 }
 0x32d   :  { %613 = vmatpush.bf16.msra.mxu0 %v604_v63  ;;  %675 = vmatpush.bf16.msra.mxu2 %v666_v19  ;;  %v1154_v19 = vmov 32.0  }
 0x331   :  { %725 = vmatpush.bf16.msrb.mxu0 %v716_v40 }
 0x352   :  { %v425_v4 = vpop.xlane.xlu1 %424 }
 0x353   :  { %1031 = vrcp.f32 %v425_v4 }
 0x354   :  { %1033 = vrcp.f32 %v1154_v19 }
 0x359   :  { %v1032_v6 = vpop.eup %1031 }
 0x35a   :  { %v441_v7 = vmul.f32 %v1032_v6, %v1020_v44 }
 0x35c   :  { %v449_v9 = vpack.c.bf16 %v441_v7, %v441_v7 }
 0x35d   :  { %v489_v10 = vpop.f32.mrf.mxu2 }
 0x35e   :  { %v620_v11 = vpack.c.bf16 %v489_v10, %v489_v10  ;;  %945 = vmatmul.msk.bf16.vlgmr.msra.gmra.mxu0 %vm353_vm3, %v449_v9 }
 0x360   :  { %v634_v13 = vunpack.c.l.b16 %v620_v11 }
 0x362   :  { %v635_v14 = vpack.c.b16 %v634_v13, %v633_v12 }
 0x364   :  { %946 = vmatmul.msk.bf16.vlgmr.msra.gmra.mxu1 %vm151_vm1, %v635_v14 }
 0x365   :  { %v491_v17 = vpop.f32.mrf.mxu2 }
 0x390   :  { %v531_v20 = vpop.f32.mrf.mxu0 }
 0x391   :  { %v622_v22 = vpack.c.bf16 %v531_v20, %v531_v20 }
 0x393   :  { %v660_v26 = vunpack.c.l.b16 %v622_v22 }
 0x394   :  { %v510_v24 = vpop.f32.mrf.mxu3 }
 0x395   :  { %v621_v25 = vpack.c.bf16 %v510_v24, %v510_v24 }
 0x397   :  { %v659_v27 = vunpack.c.l.b16 %v621_v25 }
 0x398   :  { %v533_v15 = vpop.f32.mrf.mxu0 }
 0x399   :  { %v661_v28 = vpack.c.b16 %v660_v26, %v659_v27 }
 0x39b   :  { %947 = vmatmul.msk.bf16.vlgmr.msra.gmra.mxu2 %vm151_vm1, %v661_v28 }
 0x39c   :  { %v512_v29 = vpop.f32.mrf.mxu3 }
 0x3a5   :  { %v552_v30 = vpop.f32.mrf.mxu1  ;;  %v594_v31 = vpop.f32.mrf.mxu3 }
 0x3a6   :  { %v623_v34 = vpack.c.bf16 %v552_v30, %v552_v30  ;;  %v625_v41 = vpack.c.bf16 %v594_v31, %v594_v31 }
 0x3a8   :  { %v684_v43 = vunpack.c.l.b16 %v623_v34  ;;  %v709_v47 = vunpack.c.l.b16 %v625_v41 }
 0x3ad   :  { %v554_v33 = vpop.f32.mrf.mxu1  ;;  %v596_v44 = vpop.f32.mrf.mxu3 }
 0x3ae   :  { %v979_v44 = vld [vmem:[%s1404_s4 + $0x8] sm:$0xff] }
 0x3af   :  { %v573_v42 = vpop.f32.mrf.mxu2  ;;  %835 = vmatpush.bf16.msrb.mxu1 %v979_v44 }
 0x3b0   :  { %v624_v35 = vpack.c.bf16 %v573_v42, %v573_v42 }
 0x3b2   :  { %v685_v36 = vunpack.c.l.b16 %v624_v35 }
 0x3b4   :  { %v686_v37 = vpack.c.b16 %v685_v36, %v684_v43  ;;  %v978_v43 = vld [vmem:[%s1404_s4] sm:$0xff] }
 0x3b5   :  { %836 = vmatpush.bf16.msrb.mxu1 %v978_v43 }
 0x3b6   :  { %948 = vmatmul.msk.bf16.vlgmr.msra.gmra.mxu3 %vm151_vm1, %v686_v37 }
 0x3b7   :  { %v575_v38 = vpop.f32.mrf.mxu2 }
 0x3db   :  { %v615_v45 = vpop.f32.mrf.mxu0 }
 0x3dc   :  { %v626_v46 = vpack.c.bf16 %v615_v45, %v615_v45 }
 0x3de   :  { %v710_v48 = vunpack.c.l.b16 %v626_v46 }
 0x3e0   :  { %v711_v49 = vpack.c.b16 %v710_v48, %v709_v47 }
 0x3e1   :  { %v652_v52 = vpop.f32.mrf.mxu1 }
 0x3e2   :  { %949 = vmatmul.msk.bf16.vlgmr.msrb.gmra.mxu0 %vm151_vm1, %v711_v49  ;;  %v732_v55 = vsel %vm100_vm0, %v652_v52, 0.0 }
 0x3e3   :  { %v617_v50 = vpop.f32.mrf.mxu0 }
 0x3e9   :  { %v654_v61 = vpop.f32.mrf.mxu1 }
 0x3ea   :  { %v739_v4 = vsel %vm100_vm0, %v654_v61, 0.0 }
 0x41e   :  { %v677_v51 = vpop.f32.mrf.mxu2 }
 0x41f   :  { %v733_v54 = vsel %vm100_vm0, %v677_v51, 0.0 }
 0x420   :  { %v734_v57 = vadd.f32 %v733_v54, %v732_v55  ;;  %v802_v54 = vperm.slane %v1226_v5, 2 }
 0x426   :  { %v679_v16 = vpop.f32.mrf.mxu2 }
 0x427   :  { %v740_v0 = vsel %vm100_vm0, %v679_v16, 0.0  ;;  %v805_v16 = vperm.slane %v1226_v5, 3 }
 0x428   :  { %v741_v7 = vadd.f32 %v740_v0, %v739_v4  ;;  %v982_v0 = vld [vmem:[%s1405_s5 + $0x10] sm:$0xff]  ;;  %v980_v4 = vld [vmem:[%s1405_s5] sm:$0xff] }
 0x439   :  { %v702_v53 = vpop.f32.mrf.mxu3 }
 0x43a   :  { %v735_v56 = vsel %vm100_vm0, %v702_v53, 0.0 }
 0x43b   :  { %v736_v58 = vadd.f32 %v735_v56, %v734_v57 }
 0x441   :  { %v704_v62 = vpop.f32.mrf.mxu3 }
 0x442   :  { %v742_v6 = vsel %vm100_vm0, %v704_v62, 0.0 }
 0x443   :  { %v743_v9 = vadd.f32 %v742_v6, %v741_v7  ;;  %v813_v7 = vperm.slane %v1226_v5, 4 }
 0x45f   :  { %v727_v32 = vpop.f32.mrf.mxu0 }
 0x460   :  { %v737_v60 = vsel %vm100_vm0, %v727_v32, 0.0 }
 0x461   :  { %v738_v63 = vadd.f32 %v737_v60, %v736_v58 }
 0x463   :  { %v747_v1 = vadd.f32 %v746_v59, %v738_v63  ;;  %v983_v63 = vld [vmem:[%s1405_s5 + $0x18] sm:$0xff] }
 0x464   :  { %887 = vmatpush.bf16.msrb.mxu2 %v983_v63 }
 0x465   :  { %v1356_v8 = vadd.f32 %v747_v1, %v1216_v2  ;;  %v1034_v2 = vpop.eup %1033  ;;  %v981_v1 = vld [vmem:[%s1405_s5 + $0x8] sm:$0xff]  ;;  %s1155_s5 = smov [#allocation8]  }
 0x466   :  { %v758_v20 = vmul.f32 32.0, %v1034_v2  ;;  %vm762_vm7 = vweird.f32 %v1034_v2  ;;  %s905_s15 = sshll.u32 %s1155_s5, 4  ;;  %s906_s15 = int_to_ptr.vmem [resolvable:$true] %s905_s15 }
 0x467   :  { %v729_v10 = vpop.f32.mrf.mxu0  ;;  %v751_v11 = vsel %vm100_vm0, %v1356_v8, 0.0 }
 0x468   :  { %v744_v12 = vsel %vm100_vm0, %v729_v10, 0.0  ;;  %752 = vadd.xlane.f32.xlu0 %v751_v11  ;;  %v759_v21 = vsub.f32 1.0, %v758_v20  ;;  %888 = vmatpush.bf16.msrb.mxu2 %v982_v0 }
 0x469   :  { %v745_v13 = vadd.f32 %v744_v12, %v743_v9 }
 0x46a   :  { %v760_v22 = vmul.f32 %v1034_v2, %v759_v21 }
 0x46b   :  { %v748_v14 = vadd.f32 %v746_v59, %v745_v13 }
 0x46c   :  { %v761_v23 = vadd.f32 %v1034_v2, %v760_v22  ;;  %889 = vmatpush.bf16.msrb.mxu2 %v981_v1 }
 0x46d   :  { %v1362_v17 = vadd.f32 %v748_v14, %v1221_v3 }
 0x46e   :  { %v763_v24 = vsel %vm762_vm7, %v1034_v2, %v761_v23 }
 0x46f   :  { %v754_v18 = vsel %vm100_vm0, %v1362_v17, 0.0 }
 0x470   :  { %755 = vadd.xlane.f32.xlu1 %v754_v18  ;;  %890 = vmatpush.bf16.msrb.mxu2 %v980_v4  ;;  %v854_v18 = vperm.slane %v1226_v5, 5 }
 0x4db   :  { %v753_v25 = vpop.xlane.xlu0 %752 }
 0x4dc   :  { %v764_v26 = vmul.f32 %v763_v24, %v753_v25 }
 0x4de   :  { %v766_v27 = vsub.f32 %v1356_v8, %v764_v26 }
 0x4e0   :  { %v768_v15 = vmul.f32 %v766_v27, %v766_v27 }
 0x4e2   :  { %v770_v3 = vsel %vm100_vm0, %v768_v15, 0.0 }
 0x4e3   :  { %771 = vadd.xlane.f32.xlu1 %v770_v3  ;;  %v756_v28 = vpop.xlane.xlu1 %755 }
 0x4e4   :  { %v765_v29 = vmul.f32 %v763_v24, %v756_v28 }
 0x4e6   :  { %v767_v30 = vsub.f32 %v1362_v17, %v765_v29 }
 0x4e8   :  { %v769_v31 = vmul.f32 %v767_v30, %v767_v30 }
 0x4ea   :  { %v773_v33 = vsel %vm100_vm0, %v769_v31, 0.0 }
 0x4eb   :  { %774 = vadd.xlane.f32.xlu2 %v773_v33 }
 0x556   :  { %v772_v34 = vpop.xlane.xlu1 %771 }
 0x557   :  { %v776_v42 = vmul.f32 %v772_v34, %v763_v24 }
 0x559   :  { %v778_v35 = vadd.f32 1e-06, %v776_v42 }
 0x55b   :  { %1035 = vrsqrt.f32 %v778_v35  ;;  %vm786_vm9 = vweird.f32 %v778_v35 }
 0x55e   :  { %v775_v36 = vpop.xlane.xlu2 %774 }
 0x55f   :  { %v777_v37 = vmul.f32 %v775_v36, %v763_v24 }
 0x561   :  { %v1036_v38 = vpop.eup %1035  ;;  %v779_v39 = vadd.f32 1e-06, %v777_v37 }
 0x562   :  { %v781_v40 = vmul.f32 %v1036_v38, %v778_v35  ;;  %vm787_vm8 = vweird.f32 %v1036_v38 }
 0x563   :  { %1037 = vrsqrt.f32 %v779_v39  ;;  %vm788_vm10 = vmor %vm786_vm9, %vm787_vm8  ;;  %vm796_vm12 = vweird.f32 %v779_v39 }
 0x564   :  { %v782_v41 = vmul.f32 %v1036_v38, %v781_v40 }
 0x566   :  { %v783_v45 = vmul.f32 0.5, %v782_v41 }
 0x568   :  { %v784_v46 = vsub.f32 1.5, %v783_v45 }
 0x569   :  { %v1038_v47 = vpop.eup %1037 }
 0x56a   :  { %v785_v48 = vmul.f32 %v1036_v38, %v784_v46  ;;  %v791_v49 = vmul.f32 %v1038_v47, %v779_v39  ;;  %vm797_vm11 = vweird.f32 %v1038_v47 }
 0x56b   :  { %vm798_vm13 = vmor %vm796_vm12, %vm797_vm11 }
 0x56c   :  { %v792_v50 = vmul.f32 %v1038_v47, %v791_v49  ;;  %v789_v51 = vsel %vm788_vm10, %v1036_v38, %v785_v48 }
 0x56d   :  { %v800_v55 = vmul.f32 %v789_v51, %v766_v27 }
 0x56e   :  { %v793_v52 = vmul.f32 0.5, %v792_v50 }
 0x56f   :  { %v803_v58 = vmul.f32 %v802_v54, %v800_v55 }
 0x570   :  { %v794_v53 = vsub.f32 1.5, %v793_v52 }
 0x571   :  { %v806_v60 = vadd.f32 %v805_v16, %v803_v58 }
 0x572   :  { %v795_v56 = vmul.f32 %v1038_v47, %v794_v53 }
 0x574   :  { %v799_v57 = vsel %vm798_vm13, %v1038_v47, %v795_v56 }
 0x575   :  { %v801_v32 = vmul.f32 %v799_v57, %v767_v30 }
 0x577   :  { %v804_v59 = vmul.f32 %v802_v54, %v801_v32 }
 0x579   :  { %v807_v61 = vadd.f32 %v805_v16, %v804_v59 }
 0x57b   :  { %v808_v62 = vpack.c.bf16 %v807_v61, %v806_v60 }
 0x57d   :  { %958 = vmatmul.msk.bf16.vlgmr.msrb.gmra.mxu1 %vm100_vm0, %v808_v62 }
 0x5fa   :  { %v838_v6 = vpop.f32.mrf.mxu1 }
 0x5fb   :  { %v839_v9 = vadd.f32 %v838_v6, %v813_v7 }
 0x5fd   :  { %v843_v12 = vmax.f32 %v839_v9, 0.0 }
 0x602   :  { %v840_v10 = vpop.f32.mrf.mxu1 }
 0x603   :  { %v841_v11 = vadd.f32 %v840_v10, %v813_v7 }
 0x605   :  { %v844_v13 = vmax.f32 %v841_v11, 0.0 }
 0x607   :  { %v845_v14 = vpack.c.bf16 %v844_v13, %v843_v12 }
 0x609   :  { %975 = vmatmul.msk.bf16.vlgmr.msrb.gmra.mxu2 %vm879_vm14, %v845_v14 }
 0x68c   :  { %v892_v19 = vpop.f32.mrf.mxu2 }
 0x68d   :  { %v893_v2 = vadd.f32 %v892_v19, %v854_v18 }
 0x68f   :  { %v897_v20 = vadd.f32 %v893_v2, %v1356_v8 }
 0x691   :  { %899 = vst.msk [vmem:[#allocation8] sm:$0xff] %vm100_vm0, %v897_v20 }
 0x694   :  { %v894_v21 = vpop.f32.mrf.mxu2 }
 0x695   :  { %v895_v22 = vadd.f32 %v894_v21, %v854_v18 }
 0x697   :  { %v898_v23 = vadd.f32 %v895_v22, %v1362_v17 }
 0x699   :  { %900 = vst.msk [vmem:[#allocation8 + $0x8] sm:$0xff] %vm100_vm0, %v898_v23 }
 0x69a   :  { %913 = dma.vmem_to_hbm [thread:$0]  %s906_s15, 256, %s908_s18, [#allocation4], %s1156_s1, %s1156_s1, %s1157_s19  }
 0x69b   :  { %1139 = dma.done.wait [#allocation4], 256  }
 0x69c   :  { %1140 = vsyncadd [#allocation4], 4294967040 }
 0x69d   :  { %918 = vsyncpa [#allocation3], 1 }
 0x69e   :  { %919 = vsyncpa [#allocation6], 1 }
 0x69f   :  { %920 = vsyncpa [#allocation4], 1 }

</bundles_post_ra>
